<compile_context>
chip_gen: v6e
topology: v6e:2x2x1
jax: 0.10.0
libtpu: 0.0.40
codegen_flags: <defaults>
</compile_context>

<pallas_src>
import math

import jax
import jax.numpy as jnp
from jax.experimental import pallas as pl
from jax.experimental.pallas import tpu as pltpu


_INV_SQRT2 = 1.0 / math.sqrt(2.0)


def _conv1x1_gelu_kernel(x_ref, w_ref, b_ref, o_ref):
    # x_ref: (Cin, tm)   w_ref: (Cout, Cin)   b_ref: (Cout, 1) f32
    # o_ref: (Cout, tm)  -- lane-dense: last dim is tm (multiple of 128)
    acc = jnp.dot(w_ref[...], x_ref[...], preferred_element_type=jnp.float32)
    acc = acc + b_ref[...]                                   # (Cout,1) bcast over lanes
    out = 0.5 * acc * (1.0 + jax.lax.erf(acc * _INV_SQRT2))  # exact GELU (PyTorch default)
    o_ref[...] = out.astype(o_ref.dtype)


def _round_up(x, m):
    return ((x + m - 1) // m) * m


def conv_block_forward(x_nchw, weight, bias, *, tm_target=1024,
                       vmem_budget_bytes=32 * 1024 * 1024,
                       compute_dtype=None):
    """ConvBlock forward: kernel_size=1, padding=0 Conv2d + exact GELU.

    x_nchw: (N, Cin, H, W)
    weight: (Cout, Cin, 1, 1)   (PyTorch Conv2d weight layout)
    bias:   (Cout,)
    returns (N, Cout, H, W), same dtype as x_nchw.
    """
    N, Cin, H, W = x_nchw.shape
    Cout = weight.shape[0]
    HW = H * W
    out_dtype = x_nchw.dtype

    # Optional bandwidth optimization: store activations/weights in bf16 in HBM
    # (accumulation stays f32).  Off by default to keep PyTorch-exact numerics.
    if compute_dtype is not None:
        x_nchw = x_nchw.astype(compute_dtype)
        weight = weight.astype(compute_dtype)

    # Lane-dense spatial tile: multiple of 128, capped by HW and a VMEM budget
    # (double-buffered x/out tiles must fit; keeps v7x's 64 MiB VMEM safe).
    hw128 = _round_up(HW, 128)
    tm = min(tm_target, hw128)
    dt_bytes = jnp.dtype(x_nchw.dtype).itemsize

    def tile_bytes(t):
        # double-buffered x and out blocks + resident weight (x2) + bias
        return 2 * t * (Cin + Cout) * dt_bytes + 2 * Cin * Cout * dt_bytes + 4 * Cout

    while tm > 128 and tile_bytes(tm) > vmem_budget_bytes:
        tm //= 2
    hw_pad = _round_up(HW, tm)

    # NCHW -> (N, Cin, H*W): contiguous reshape, no transpose / extra HBM pass.
    x_flat = x_nchw.reshape(N, Cin, HW)
    if hw_pad != HW:
        x_flat = jnp.pad(x_flat, ((0, 0), (0, 0), (0, hw_pad - HW)))

    w_mat = weight.reshape(Cout, Cin)
    b_col = bias.astype(jnp.float32).reshape(Cout, 1)  # pre-cast once, grid-invariant

    grid = (N, hw_pad // tm)
    vmem_limit = int(min(max(4 * tile_bytes(tm), 16 * 1024 * 1024),
                         100 * 1024 * 1024))

    out_flat = pl.pallas_call(
        _conv1x1_gelu_kernel,
        out_shape=jax.ShapeDtypeStruct((N, Cout, hw_pad), out_dtype),
        grid_spec=pltpu.PrefetchScalarGridSpec(
            num_scalar_prefetch=0,
            grid=grid,
            in_specs=[
                # batch dim squeezed (None) -> kernel sees (Cin, tm)
                pl.BlockSpec((None, Cin, tm), lambda n, i: (n, 0, i)),
                pl.BlockSpec((Cout, Cin), lambda n, i: (0, 0)),
                pl.BlockSpec((Cout, 1), lambda n, i: (0, 0)),
            ],
            out_specs=pl.BlockSpec((None, Cout, tm), lambda n, i: (n, 0, i)),
        ),
        compiler_params=pltpu.CompilerParams(
            dimension_semantics=("parallel", "parallel"),
            vmem_limit_bytes=vmem_limit,
        ),
    )(x_flat, w_mat, b_col)

    if hw_pad != HW:
        out_flat = out_flat[:, :, :HW]
    return out_flat.reshape(N, Cout, H, W)


def init_conv_params(key, in_channels, out_channels, kernel_size=1):
    """Deterministic init mirroring PyTorch Conv2d defaults (uniform +-1/sqrt(fan_in))."""
    kw, kb = jax.random.split(key)
    fan_in = in_channels * kernel_size * kernel_size
    bound = 1.0 / math.sqrt(fan_in)
    weight = jax.random.uniform(
        kw, (out_channels, in_channels, kernel_size, kernel_size),
        minval=-bound, maxval=bound, dtype=jnp.float32)
    bias = jax.random.uniform(
        kb, (out_channels,), minval=-bound, maxval=bound, dtype=jnp.float32)
    return weight, bias


def _reference(x, weight, bias):
    Cout, Cin = weight.shape[0], weight.shape[1]
    w = weight.reshape(Cout, Cin)
    y = jnp.einsum('oc,nchw->nohw', w, x) + bias[None, :, None, None]
    return 0.5 * y * (1.0 + jax.lax.erf(y * _INV_SQRT2))


if __name__ == "__main__":
    key = jax.random.PRNGKey(0)
    kx1, kx2, kp = jax.random.split(key, 3)

    N, Cin, Cout = 2, 4, 8
    weight, bias = init_conv_params(kp, Cin, Cout, kernel_size=1)

    # Case 1: aligned spatial size (H*W multiple of 128)
    H, W = 16, 16
    x = jax.random.normal(kx1, (N, Cin, H, W), dtype=jnp.float32)
    out = jax.block_until_ready(conv_block_forward(x, weight, bias))
    ref = _reference(x, weight, bias)
    assert out.shape == (N, Cout, H, W)
    assert jnp.allclose(out, ref, atol=1e-5, rtol=1e-5)

    # Case 2: ragged spatial size (H*W not a multiple of 128) exercises padding
    H2, W2 = 15, 17
    x2 = jax.random.normal(kx2, (N, Cin, H2, W2), dtype=jnp.float32)
    out2 = jax.block_until_ready(conv_block_forward(x2, weight, bias))
    ref2 = _reference(x2, weight, bias)
    assert out2.shape == (N, Cout, H2, W2)
    assert jnp.allclose(out2, ref2, atol=1e-5, rtol=1e-5)

    print("KERNEL_OK")
</pallas_src>

<mosaic_0001>
module attributes {stable_mosaic.version = 11 : i64} {
  func.func @_conv1x1_gelu_kernel(%arg0: i32, %arg1: i32, %arg2: memref<1x4x256xf32, #tpu.memory_space<vmem>>, %arg3: memref<8x4xf32, #tpu.memory_space<vmem>>, %arg4: memref<8x1xf32, #tpu.memory_space<vmem>>, %arg5: memref<1x8x256xf32, #tpu.memory_space<vmem>>) attributes {dimension_semantics = [#tpu.dimension_semantics<parallel>, #tpu.dimension_semantics<parallel>], iteration_bounds = array<i64: 2, 1>, scalar_prefetch = 0 : i64, scratch_operands = 0 : i64, tpu.core_type = #tpu.core_type<tc>, window_params = [{transform_indices = @transform_0, window_bounds = array<i64: 1, 4, 256>}, {pipeline_mode = #tpu.pipeline_mode<synchronous>, transform_indices = @transform_1, window_bounds = array<i64: 8, 4>}, {pipeline_mode = #tpu.pipeline_mode<synchronous>, transform_indices = @transform_2, window_bounds = array<i64: 8, 1>}, {transform_indices = @transform_3, window_bounds = array<i64: 1, 8, 256>}]} {
    %c0 = arith.constant 0 : index
    %c0_0 = arith.constant 0 : index
    %0 = vector.load %arg3[%c0, %c0_0] : memref<8x4xf32, #tpu.memory_space<vmem>>, vector<8x4xf32>
    %c0_1 = arith.constant 0 : index
    %c0_2 = arith.constant 0 : index
    %c0_3 = arith.constant 0 : index
    %1 = vector.load %arg2[%c0_1, %c0_2, %c0_3] : memref<1x4x256xf32, #tpu.memory_space<vmem>>, vector<1x4x256xf32>
    %2 = vector.shape_cast %1 : vector<1x4x256xf32> to vector<4x256xf32>
    %cst = arith.constant dense<0.000000e+00> : vector<8x256xf32>
    %3 = tpu.matmul %0, %2, %cst {dimension_numbers = #tpu.dot_dimension_numbers<[1], [0], [0], [1], [0, 0, 1, 1], [], []>} : vector<8x4xf32>, vector<4x256xf32>, vector<8x256xf32> -> vector<8x256xf32>
    %c0_4 = arith.constant 0 : index
    %c0_5 = arith.constant 0 : index
    %4 = vector.load %arg4[%c0_4, %c0_5] : memref<8x1xf32, #tpu.memory_space<vmem>>, vector<8x1xf32>
    %5 = vector.broadcast %4 : vector<8x1xf32> to vector<8x256xf32>
    %6 = arith.addf %3, %5 : vector<8x256xf32>
    %cst_6 = arith.constant 5.000000e-01 : f32
    %7 = vector.broadcast %cst_6 : f32 to vector<8x256xf32>
    %8 = arith.mulf %7, %6 : vector<8x256xf32>
    %cst_7 = arith.constant 0.707106769 : f32
    %9 = vector.broadcast %cst_7 : f32 to vector<8x256xf32>
    %10 = arith.mulf %6, %9 : vector<8x256xf32>
    %11 = math.erf %10 : vector<8x256xf32>
    %cst_8 = arith.constant 1.000000e+00 : f32
    %12 = vector.broadcast %cst_8 : f32 to vector<8x256xf32>
    %13 = arith.addf %12, %11 : vector<8x256xf32>
    %14 = arith.mulf %8, %13 : vector<8x256xf32>
    %c0_9 = arith.constant 0 : index
    %c0_10 = arith.constant 0 : index
    %c0_11 = arith.constant 0 : index
    %15 = vector.load %arg5[%c0_9, %c0_10, %c0_11] : memref<1x8x256xf32, #tpu.memory_space<vmem>>, vector<1x8x256xf32>
    %16 = vector.shape_cast %15 : vector<1x8x256xf32> to vector<8x256xf32>
    %17 = vector.shape_cast %14 : vector<8x256xf32> to vector<1x8x256xf32>
    tpu.vector_store %arg5[%c0_9, %c0_10, %c0_11], %17 {strides = array<i32>} : memref<1x8x256xf32, #tpu.memory_space<vmem>>, vector<1x8x256xf32>,
    return
  }
  func.func @transform_0(%arg0: i32, %arg1: i32) -> (i32, i32, i32) {
    %c0_i32 = arith.constant 0 : i32
    %c0_i32_0 = arith.constant 0 : i32
    return %arg0, %c0_i32, %arg1 : i32, i32, i32
  }
  func.func @transform_1(%arg0: i32, %arg1: i32) -> (i32, i32) {
    %c0_i32 = arith.constant 0 : i32
    %c0_i32_0 = arith.constant 0 : i32
    %c0_i32_1 = arith.constant 0 : i32
    return %c0_i32, %c0_i32_0 : i32, i32
  }
  func.func @transform_2(%arg0: i32, %arg1: i32) -> (i32, i32) {
    %c0_i32 = arith.constant 0 : i32
    %c0_i32_0 = arith.constant 0 : i32
    %c0_i32_1 = arith.constant 0 : i32
    return %c0_i32, %c0_i32_0 : i32, i32
  }
  func.func @transform_3(%arg0: i32, %arg1: i32) -> (i32, i32, i32) {
    %c0_i32 = arith.constant 0 : i32
    %c0_i32_0 = arith.constant 0 : i32
    return %arg0, %c0_i32, %arg1 : i32, i32, i32
  }
}

</mosaic_0001>

<bundles_post_ra>
// kernel: tpu_custom_call.1
= control target key start
LH: loop header
LB: loop body
LE: loop exit
PB: predicated region body
PF: predicated region fallthrough
CT: control target
= control target key end

     0   :  { %8 = vsyncpa [#allocation3], 0  ;;  %s682_s0 = inlined_call_operand.vmem [shape: f32[2,4,256], index: 0, kind: input, shape index: {}]   ;;  %s683_s1 = inlined_call_operand.vmem [shape: f32[8,4], index: 1, kind: input, shape index: {}]   ;;  %s684_s2 = inlined_call_operand.vmem [shape: f32[8,1], index: 2, kind: input, shape index: {}]   ;;  %s685_s3 = inlined_call_operand.hbm [shape: f32[2,8,256], index: 3, kind: output, shape index: {}]  }
   0x1   :  { %10 = vsyncpa [#allocation3 + $0x1], 0  ;;  %s577_s12 = smov 0   ;;  %s579_s13 = smov 0  }
   0x2   :  { %s581_s14 = smov 0   ;;  %s583_s15 = smov 0  }
   0x3   :  { %s585_s16 = smov 0   ;;  %s587_s17 = smov 0  }
   0x4 LB: > { %s395_s18 = sadd.s32 4294967295, %s552_s17   ;;  %s396_s19 = sadd.s32 4294967294, %s552_s17   ;;  %s552_s17 = sphi %s587_s17, %s16_s17   ;;  %s548_s16 = sphi %s585_s16, %s692_s16   ;;  %s544_s15 = sphi %s583_s15, %s691_s15   ;;  %s540_s14 = sphi %s581_s14, %s690_s14   ;;  %s536_s13 = sphi %s579_s13, %s689_s13   ;;  %s532_s12 = sphi %s577_s12, %s688_s12  }
   0x5   : > { %s28_s20 = sadd.s32 1, %s548_s16  ;;  %s107_s21 = sadd.s32 1, %s540_s14 }
   0x6   : > { %p30_p0 = scmp.ge.s32.totalorder %s28_s20, 2  ;;  %p117_p1 = scmp.ne.s32.totalorder %s540_s14, %s536_s13 }
   0x7   : > { %p118_p2 = scmp.eq.s32.totalorder %s395_s18, 1  ;;  %p123_p3 = scmp.ne.s32.totalorder %s536_s13, %s532_s12 }
   0x8   : > { %s694_s20 = smov (%p30_p0, %s28_s20), 0  ;;  %p124_p5 = scmp.eq.s32.totalorder %s396_s19, 1 }
   0x9   : > { %p617_p4 = por %p118_p2, %p117_p1  ;;  %s102_s23 = ssub.s32 %s548_s16, %s694_s20 }
   0xa   : > { %p399_p6 = scmp.ge.s32.totalorder %s552_s17, 1  ;;  %p105_p7 = scmp.eq.s32.totalorder %s102_s23, 0 }
   0xb   : > { %p624_p8 = por %p124_p5, %p123_p3  ;;  %p161_p9 = scmp.lt.s32.totalorder %s552_s17, 3 }
   0xc   : > { %s630_s25 = scalar_select %p105_p7, %s540_s14, %s107_s21  }
   0xd   : > { %p162_p10 = pnand %p399_p6, %p161_p9 }
   0xe   : > { %p190_p11 = scmp.lt.s32.totalorder (!%p162_p10), %s544_s15, 1  ;;  %s186_s8 = sand.u32 (!%p162_p10), 1, %s536_s13  }
   0xf   : > { %165 = sbr.rel (%p162_p10) target bundleno = 259 (0x103), region = 32  ;;  %s400_s9 = sshll.u32 (!%p162_p10), %s186_s8, 4 }
  0x10   : > { %s412_s10 = sshll.u32 (!%p162_p10), %s544_s15, 8  ;;  %s188_s11 = scalar_lea.vmem (!%p162_p10), [#allocation2], %s400_s9 }
  0x11   : > { %s319_s18 = sshll.u32 (!%p162_p10), %s188_s11, 4  ;;  %s317_s23 = scalar_lea.hbm (!%p162_p10), %s685_s3, %s412_s10  ;;  %s320_s18 = int_to_ptr.vmem [resolvable:$true] %s319_s18 }
  0x12   : > { %s303_s26 = scalar_lea.sflag (!%p162_p10), [#allocation3], %s186_s8  ;;  %s476_s27 = scalar_lea.vmem (!%p162_p10), %s320_s18, 256 }
  0x13   : > { %p477_p12 = scmp.ne.s32.totalorder (!%p162_p10), %s320_s18, %s476_s27 }
  0x14   : > { %v554_v0 = vmov 0.0   ;;  %v555_v1 = vmov 0   ;;  %v202_v2 = vld [vmem:[%s684_s2] sm:$0xff]  ;;  %s191_s28 = scalar_select %p190_p11, %s544_s15, 1  ;;  %vm214_vm0 = vcmask 1043456   ;;  %vm210_vm1 = vcmask 31744  }
  0x15   : > { %283 = vmatprep.mubr.f32.mxu0 %v554_v0  ;;  %470 = vset.pattern.permute.xlu0 %v555_v1  ;;  %v200_v5 = vld [vmem:[%s683_s1] sm:$0xff]  ;;  %p478_p13 = pnand %p477_p12, %p617_p4  ;;  %s556_s15 = smov [#allocation2]  }
  0x16   : > { %205 = vperm.xlu0 %470, %v202_v2   ;;  %s411_s29 = sshll.u32 %s191_s28, 3  ;;  %s480_s28 = sshll.u32 %s556_s15, 4  ;;  %s481_s28 = int_to_ptr.vmem [resolvable:$false] %s480_s28 }
  0x17   : > { %s197_s5 = scalar_lea.vmem %s682_s0, %s411_s29  ;;  %p479_p0 = pneg %p478_p13 }
  0x18   : > { %v201_v3 = vld [vmem:[%s197_s5] sm:$0xff]  ;;  %s482_s29 = scalar_lea.vmem %s481_s28, 512  ;;  %p483_p1 = scmp.lt.s32.totalorder %s320_s18, %s481_s28 }
  0x19   : > { %v209_v4 = vcombine.high %v201_v3, %v201_v3  ;;  %p484_p2 = scmp.lt.s32.totalorder %s482_s29, %s476_s27 }
  0x1b   : > { %403 = vmatprep.subr.msk.mxu0 %vm214_vm0, %v209_v4  ;;  %p485_p3 = por %p484_p2, %p483_p1 }
  0x1c   : > { %404 = vmatpush1.msk.msra.mxu0 %vm214_vm0, %v201_v3 }
  0x1d   : > { %405 = vmatmul.mubr.msk.f32.vlgmr.msra.gmra.mxu0 %vm210_vm1, %v200_v5  ;;  %p486_p5 = pnand %p485_p3, %p479_p0 }
  0x91   : > { %v206_v6 = vpop.permute.xlu0 %205 }
  0xdd   : > { %v285_v7 = vpop.f32.mrf.mxu0 }
  0xde   : > { %v286_v8 = vadd.f32 %v285_v7, %v206_v6 }
  0xdf   : > { %v287_v9 = vpop.f32.mrf.mxu0 }
  0xe0   : > { %v292_v10 = vmul.f32 0.70710677, %v286_v8  ;;  %v288_v11 = vadd.f32 %v287_v9, %v206_v6  ;;  %v290_v14 = vmul.f32 0.5, %v286_v8 }
  0xe2   : > { %472 = verf.f32 %v292_v10  ;;  %v293_v12 = vmul.f32 0.70710677, %v288_v11  ;;  %v291_v18 = vmul.f32 0.5, %v288_v11 }
  0xe4   : > { %474 = verf.f32 %v293_v12 }
  0xef   : > { %v473_v13 = vpop.eup %472 }
  0xf0   : > { %v296_v15 = vadd.f32 1.0, %v473_v13 }
  0xf1   : > { %v475_v16 = vpop.eup %474 }
  0xf2   : > { %v298_v17 = vmul.f32 %v296_v15, %v290_v14  ;;  %v297_v19 = vadd.f32 1.0, %v475_v16 }
  0xf4   : > { %v299_v20 = vmul.f32 %v297_v19, %v291_v18  ;;  %300 = vst [vmem:[%s188_s11] sm:$0xff] %v298_v17 }
  0xf6   : > { %301 = vst [vmem:[%s188_s11 + $0x8] sm:$0xff] %v299_v20 }
  0xf7   : > { %489 = shalt.err (!%p486_p5)
}
  0xf8   : > { %s490_s30 = scalar_lea.hbm %s317_s23, 256  ;;  %s494_s6 = scalar_lea.hbm %s685_s3, 512 }
  0xf9   : > { %p491_p6 = scmp.ne.s32.totalorder %s317_s23, %s490_s30  ;;  %p495_p10 = scmp.lt.s32.totalorder %s317_s23, %s685_s3 }
  0xfa   : > { %p496_p11 = scmp.lt.s32.totalorder %s494_s6, %s490_s30 }
  0xfb   : > { %p492_p7 = pnand %p491_p6, %p617_p4 }
  0xfc   : > { %p497_p12 = por %p496_p11, %p495_p10 }
  0xfd   : > { %p493_p9 = pneg %p492_p7 }
  0xff   : > { %p498_p13 = pnand %p497_p12, %p493_p9 }
 0x101   : > { %501 = shalt.err (!%p498_p13)
}
 0x102   : > { %413 = dma.vmem_to_hbm [thread:$0]  (%p617_p4), %s320_s18, 256, %s317_s23, %s303_s26  }
 0x103 PF: > { %p419_p0 = scmp.ge.s32.totalorder %s552_s17, 2  ;;  %s331_s9 = sand.u32 1, %s532_s12  }
 0x104   : > { %s332_s10 = scalar_lea.sflag [#allocation3], %s331_s9 }
 0x105   : > { %p416_p1 = pnand %p419_p0, %p624_p8 }
 0x107   : > { %p417_p2 = pneg %p416_p1 }
 0x109   : > { %527 = dma.done.wait (%p417_p2), %s332_s10, 256  }
 0x10a   : > { %529 = vsyncadd (%p417_p2), %s332_s10, 4294967040  ;;  %s16_s17 = sadd.s32 1, %s552_s17   ;;  %s688_s12 = smov %s536_s13 }
 0x10b   : > { %p13_p3 = scmp.ge.s32.totalorder %s16_s17, 4   ;;  %s689_s13 = smov %s540_s14 }
 0x10c   : > { %s690_s14 = smov %s630_s25  ;;  %s691_s15 = smov %s548_s16 }
 0x10d   : > { %s692_s16 = smov %s694_s20  ;;  %15 = sbr.rel (!%p13_p3) target bundleno = 4 (0x4), region = 67 }
 0x112   :  { %337 = vsyncpa [#allocation3], 1 }
 0x113   :  { %339 = vsyncpa [#allocation3 + $0x1], 1 }

</bundles_post_ra>
